<compile_context>
chip_gen: v7x
topology: tpu7x:2x2x1
jax: 0.10.0
libtpu: 0.0.40
codegen_flags: <defaults>
</compile_context>

<pallas_src>
import functools
import math

import jax
import jax.numpy as jnp
from jax import lax
from jax.experimental import pallas as pl
from jax.experimental.pallas import tpu as pltpu

LANES = 128
SUBLANES = 8


def _balanced_l1_kernel(pred_ref, target_ref, weight_ref, sum_ref, cnt_ref, *,
                        n_valid, alpha, gamma, beta, b, alpha_over_b,
                        b_over_beta, tail_const, tiles_per_split, block_rows):
    p = pl.program_id(0)   # "parallel" split (one per TensorCore on v7x)
    t = pl.program_id(1)   # "arbitrary" reduction axis over tiles

    # Re-initialize this split's resident output accumulators.
    @pl.when(t == 0)
    def _():
        sum_ref[...] = jnp.zeros_like(sum_ref)
        cnt_ref[...] = jnp.zeros_like(cnt_ref)

    tile_elems = block_rows * LANES
    tile_idx = p * tiles_per_split + t
    # How many elements of this logical tile are real data (rest is masked).
    limit = n_valid - tile_idx * tile_elems

    local_idx = (
        lax.broadcasted_iota(jnp.int32, (block_rows, LANES), 0) * LANES
        + lax.broadcasted_iota(jnp.int32, (block_rows, LANES), 1))
    valid = local_idx < limit

    pred = pred_ref[...].astype(jnp.float32)
    target = target_ref[...].astype(jnp.float32)
    weight = jnp.where(valid, weight_ref[...].astype(jnp.float32), 0.0)

    # Mask diff too so garbage in out-of-bounds / padded lanes can never
    # poison the sum (NaN * 0 = NaN).
    diff = jnp.where(valid, jnp.abs(pred - target), 0.0)

    loss = jnp.where(
        diff < beta,
        alpha_over_b * (b * diff + 1.0) * jnp.log(b_over_beta * diff + 1.0)
        - alpha * diff,
        gamma * diff + tail_const,
    )

    # Fold (block_rows, 128) -> (block_rows//8, 8, 128) and reduce the major
    # axis: pure VALU adds into an (8,128)-shaped vreg accumulator.
    lw = (loss * weight).reshape(-1, SUBLANES, LANES)
    pos = jnp.where(weight > 0.0, 1.0, 0.0).reshape(-1, SUBLANES, LANES)
    sum_ref[...] += jnp.sum(lw, axis=0, keepdims=True)
    cnt_ref[...] += jnp.sum(pos, axis=0, keepdims=True)


@functools.partial(
    jax.jit,
    static_argnames=("alpha", "gamma", "beta", "loss_weight",
                     "rows_per_tile", "num_splits"))
def balanced_l1_loss(pred, target, weight, *, alpha=0.5, gamma=1.5, beta=1.0,
                     loss_weight=1.0, rows_per_tile=2048, num_splits=2):
    assert pred.shape == target.shape == weight.shape
    n = pred.size
    quant = SUBLANES * LANES                      # 1024-element alignment
    padded = pl.cdiv(n, quant) * quant
    rows = padded // LANES                        # multiple of 8

    def prep(x):
        flat = jnp.ravel(x)                       # free for contiguous input
        if not jnp.issubdtype(flat.dtype, jnp.floating):
            flat = flat.astype(jnp.float32)
        if padded != n:                           # minimal pad (< 1024 elems)
            flat = jnp.pad(flat, (0, padded - n))
        return flat.reshape(rows, LANES)

    p2, t2, w2 = prep(pred), prep(target), prep(weight)

    rpt = max(SUBLANES, (int(rows_per_tile) // SUBLANES) * SUBLANES)
    block_rows = min(rpt, rows)
    num_tiles = pl.cdiv(rows, block_rows)
    splits = max(1, min(int(num_splits), num_tiles))
    tps = pl.cdiv(num_tiles, splits)              # tiles handled per split

    b = math.e ** (gamma / alpha) - 1.0           # python-time constants
    kernel = functools.partial(
        _balanced_l1_kernel,
        n_valid=int(n),
        alpha=float(alpha), gamma=float(gamma), beta=float(beta),
        b=float(b),
        alpha_over_b=float(alpha / b),
        b_over_beta=float(b / beta),
        tail_const=float(gamma / b - alpha * beta),
        tiles_per_split=int(tps),
        block_rows=int(block_rows),
    )

    def in_map(pi, ti):
        # Clamp so that "excess" logical tiles (splits*tps > num_tiles) reread
        # an in-bounds block; their contribution is zeroed by the mask.
        return (jnp.minimum(pi * tps + ti, num_tiles - 1), 0)

    data_spec = pl.BlockSpec((block_rows, LANES), in_map)
    acc_spec = pl.BlockSpec((1, SUBLANES, LANES), lambda pi, ti: (pi, 0, 0))

    sum_out, cnt_out = pl.pallas_call(
        kernel,
        out_shape=(
            jax.ShapeDtypeStruct((splits, SUBLANES, LANES), jnp.float32),
            jax.ShapeDtypeStruct((splits, SUBLANES, LANES), jnp.float32),
        ),
        grid_spec=pltpu.PrefetchScalarGridSpec(
            num_scalar_prefetch=0,
            grid=(splits, tps),
            in_specs=[data_spec, data_spec, data_spec],
            out_specs=[acc_spec, acc_spec],
        ),
        compiler_params=pltpu.CompilerParams(
            dimension_semantics=("parallel", "arbitrary")),
    )(p2, t2, w2)

    # Tiny epilogue in plain JAX: one cross-lane reduce + the division.
    total = jnp.sum(sum_out)
    count = jnp.sum(cnt_out)
    avg_factor = count / 4.0 + 1e-6
    return (loss_weight * total / avg_factor)[None]


class BalancedL1Loss:
    """JAX/Pallas port of mmdet BalancedL1Loss (forward only)."""

    def __init__(self, alpha=0.5, gamma=1.5, beta=1.0, loss_weight=1.0):
        self.alpha = alpha
        self.gamma = gamma
        self.beta = beta
        self.loss_weight = loss_weight

    def __call__(self, pred, target, weight):
        return balanced_l1_loss(
            pred, target, weight,
            alpha=self.alpha, gamma=self.gamma, beta=self.beta,
            loss_weight=self.loss_weight)


def _reference(pred, target, weight, alpha, gamma, beta, loss_weight):
    pred = pred.astype(jnp.float32)
    target = target.astype(jnp.float32)
    weight = weight.astype(jnp.float32)
    diff = jnp.abs(pred - target)
    b = math.e ** (gamma / alpha) - 1.0
    loss = jnp.where(
        diff < beta,
        (alpha / b) * (b * diff + 1.0) * jnp.log(b * diff / beta + 1.0)
        - alpha * diff,
        gamma * diff + gamma / b - alpha * beta,
    )
    avg_factor = jnp.sum(weight > 0).astype(jnp.float32) / 4.0 + 1e-6
    return (loss_weight * jnp.sum(loss * weight) / avg_factor)[None]


if __name__ == "__main__":
    key = jax.random.PRNGKey(0)
    k1, k2, k3 = jax.random.split(key, 3)

    N = 64  # number of boxes, 4 regression targets each
    pred = jax.random.normal(k1, (N, 4), dtype=jnp.float32) * 2.0
    target = jax.random.normal(k2, (N, 4), dtype=jnp.float32) * 2.0
    # binary per-element weights (some boxes masked out), as mmdet uses
    weight = (jax.random.uniform(k3, (N, 4)) > 0.3).astype(jnp.float32)

    module = BalancedL1Loss(alpha=0.5, gamma=1.5, beta=1.0, loss_weight=1.0)
    out = jax.block_until_ready(module(pred, target, weight))

    ref = _reference(pred, target, weight, 0.5, 1.5, 1.0, 1.0)
    assert out.shape == (1,)
    assert jnp.allclose(out, ref, rtol=1e-5, atol=1e-5), (out, ref)

    print("KERNEL_OK")
</pallas_src>

<mosaic_0001>
module attributes {stable_mosaic.version = 11 : i64} {
  func.func @_balanced_l1_kernel(%arg0: i32, %arg1: i32, %arg2: memref<8x128xf32, #tpu.memory_space<vmem>>, %arg3: memref<8x128xf32, #tpu.memory_space<vmem>>, %arg4: memref<8x128xf32, #tpu.memory_space<vmem>>, %arg5: memref<1x8x128xf32, #tpu.memory_space<vmem>>, %arg6: memref<1x8x128xf32, #tpu.memory_space<vmem>>) attributes {dimension_semantics = [#tpu.dimension_semantics<parallel>, #tpu.dimension_semantics<arbitrary>], iteration_bounds = array<i64: 1, 1>, scalar_prefetch = 0 : i64, scratch_operands = 0 : i64, tpu.core_type = #tpu.core_type<tc>, window_params = [{transform_indices = @transform_0, window_bounds = array<i64: 8, 128>}, {transform_indices = @transform_1, window_bounds = array<i64: 8, 128>}, {transform_indices = @transform_2, window_bounds = array<i64: 8, 128>}, {transform_indices = @transform_3, window_bounds = array<i64: 1, 8, 128>}, {transform_indices = @transform_4, window_bounds = array<i64: 1, 8, 128>}]} {
    %c0_i32 = arith.constant 0 : i32
    %0 = arith.cmpi eq, %arg1, %c0_i32 : i32
    %1 = arith.extui %0 : i1 to i32
    %c0_i32_0 = arith.constant 0 : i32
    %2 = arith.cmpi ne, %1, %c0_i32_0 : i32
    scf.if %2 {
      %cst_33 = arith.constant 0.000000e+00 : f32
      %63 = vector.broadcast %cst_33 : f32 to vector<1x8x128xf32>
      %c0_34 = arith.constant 0 : index
      %c0_35 = arith.constant 0 : index
      %c0_36 = arith.constant 0 : index
      %64 = vector.load %arg5[%c0_34, %c0_35, %c0_36] : memref<1x8x128xf32, #tpu.memory_space<vmem>>, vector<1x8x128xf32>
      tpu.vector_store %arg5[%c0_34, %c0_35, %c0_36], %63 {strides = array<i32>} : memref<1x8x128xf32, #tpu.memory_space<vmem>>, vector<1x8x128xf32>,
      %cst_37 = arith.constant 0.000000e+00 : f32
      %65 = vector.broadcast %cst_37 : f32 to vector<1x8x128xf32>
      %c0_38 = arith.constant 0 : index
      %c0_39 = arith.constant 0 : index
      %c0_40 = arith.constant 0 : index
      %66 = vector.load %arg6[%c0_38, %c0_39, %c0_40] : memref<1x8x128xf32, #tpu.memory_space<vmem>>, vector<1x8x128xf32>
      tpu.vector_store %arg6[%c0_38, %c0_39, %c0_40], %65 {strides = array<i32>} : memref<1x8x128xf32, #tpu.memory_space<vmem>>, vector<1x8x128xf32>,
    } else {
    }
    %c1_i32 = arith.constant 1 : i32
    %3 = arith.muli %arg0, %c1_i32 : i32
    %4 = arith.addi %3, %arg1 : i32
    %c1024_i32 = arith.constant 1024 : i32
    %5 = arith.muli %4, %c1024_i32 : i32
    %c256_i32 = arith.constant 256 : i32
    %6 = arith.subi %c256_i32, %5 : i32
    %7 = tpu.iota {dimensions = array<i32: 0>} : vector<8x128xi32>
    %c128_i32 = arith.constant 128 : i32
    %8 = vector.broadcast %c128_i32 : i32 to vector<8x128xi32>
    %9 = arith.muli %7, %8 : vector<8x128xi32>
    %10 = tpu.iota {dimensions = array<i32: 1>} : vector<8x128xi32>
    %11 = arith.addi %9, %10 : vector<8x128xi32>
    %12 = vector.broadcast %6 : i32 to vector<8x128xi32>
    %13 = arith.cmpi slt, %11, %12 : vector<8x128xi32>
    %c0 = arith.constant 0 : index
    %c0_1 = arith.constant 0 : index
    %14 = vector.load %arg2[%c0, %c0_1] : memref<8x128xf32, #tpu.memory_space<vmem>>, vector<8x128xf32>
    %c0_2 = arith.constant 0 : index
    %c0_3 = arith.constant 0 : index
    %15 = vector.load %arg3[%c0_2, %c0_3] : memref<8x128xf32, #tpu.memory_space<vmem>>, vector<8x128xf32>
    %c0_4 = arith.constant 0 : index
    %c0_5 = arith.constant 0 : index
    %16 = vector.load %arg4[%c0_4, %c0_5] : memref<8x128xf32, #tpu.memory_space<vmem>>, vector<8x128xf32>
    %cst = arith.constant 0.000000e+00 : f32
    %17 = vector.broadcast %cst : f32 to vector<8x128xf32>
    %18 = arith.select %13, %16, %17 : vector<8x128xi1>, vector<8x128xf32>
    %19 = arith.subf %14, %15 : vector<8x128xf32>
    %20 = math.absf %19 : vector<8x128xf32>
    %cst_6 = arith.constant 0.000000e+00 : f32
    %21 = vector.broadcast %cst_6 : f32 to vector<8x128xf32>
    %22 = arith.select %13, %20, %21 : vector<8x128xi1>, vector<8x128xf32>
    %cst_7 = arith.constant 1.000000e+00 : f32
    %23 = vector.broadcast %cst_7 : f32 to vector<8x128xf32>
    %24 = arith.cmpf olt, %22, %23 : vector<8x128xf32>
    %cst_8 = arith.constant 19.085537 : f32
    %25 = vector.broadcast %cst_8 : f32 to vector<8x128xf32>
    %26 = arith.mulf %25, %22 : vector<8x128xf32>
    %cst_9 = arith.constant 1.000000e+00 : f32
    %27 = vector.broadcast %cst_9 : f32 to vector<8x128xf32>
    %28 = arith.addf %26, %27 : vector<8x128xf32>
    %cst_10 = arith.constant 0.0261978488 : f32
    %29 = vector.broadcast %cst_10 : f32 to vector<8x128xf32>
    %30 = arith.mulf %29, %28 : vector<8x128xf32>
    %cst_11 = arith.constant 19.085537 : f32
    %31 = vector.broadcast %cst_11 : f32 to vector<8x128xf32>
    %32 = arith.mulf %31, %22 : vector<8x128xf32>
    %cst_12 = arith.constant 1.000000e+00 : f32
    %33 = vector.broadcast %cst_12 : f32 to vector<8x128xf32>
    %34 = arith.addf %32, %33 : vector<8x128xf32>
    %35 = math.log %34 : vector<8x128xf32>
    %36 = arith.mulf %30, %35 : vector<8x128xf32>
    %cst_13 = arith.constant 5.000000e-01 : f32
    %37 = vector.broadcast %cst_13 : f32 to vector<8x128xf32>
    %38 = arith.mulf %37, %22 : vector<8x128xf32>
    %39 = arith.subf %36, %38 : vector<8x128xf32>
    %cst_14 = arith.constant 1.500000e+00 : f32
    %40 = vector.broadcast %cst_14 : f32 to vector<8x128xf32>
    %41 = arith.mulf %40, %22 : vector<8x128xf32>
    %cst_15 = arith.constant -0.421406448 : f32
    %42 = vector.broadcast %cst_15 : f32 to vector<8x128xf32>
    %43 = arith.addf %41, %42 : vector<8x128xf32>
    %44 = arith.select %24, %39, %43 : vector<8x128xi1>, vector<8x128xf32>
    %45 = arith.mulf %44, %18 : vector<8x128xf32>
    %46 = vector.shape_cast %45 : vector<8x128xf32> to vector<1x8x128xf32>
    %cst_16 = arith.constant 0.000000e+00 : f32
    %47 = vector.broadcast %cst_16 : f32 to vector<8x128xf32>
    %48 = arith.cmpf ogt, %18, %47 : vector<8x128xf32>
    %cst_17 = arith.constant 1.000000e+00 : f32
    %cst_18 = arith.constant 0.000000e+00 : f32
    %49 = vector.broadcast %cst_17 : f32 to vector<8x128xf32>
    %50 = vector.broadcast %cst_18 : f32 to vector<8x128xf32>
    %51 = arith.select %48, %49, %50 : vector<8x128xi1>, vector<8x128xf32>
    %52 = vector.shape_cast %51 : vector<8x128xf32> to vector<1x8x128xf32>
    %c0_19 = arith.constant 0 : index
    %c0_20 = arith.constant 0 : index
    %c0_21 = arith.constant 0 : index
    %53 = vector.load %arg5[%c0_19, %c0_20, %c0_21] : memref<1x8x128xf32, #tpu.memory_space<vmem>>, vector<1x8x128xf32>
    %cst_22 = arith.constant dense<0.000000e+00> : vector<8x128xf32>
    %54 = vector.multi_reduction <add>, %46, %cst_22 [0] : vector<1x8x128xf32> to vector<8x128xf32>
    %55 = vector.shape_cast %54 : vector<8x128xf32> to vector<1x8x128xf32>
    %56 = arith.addf %53, %55 : vector<1x8x128xf32>
    %c0_23 = arith.constant 0 : index
    %c0_24 = arith.constant 0 : index
    %c0_25 = arith.constant 0 : index
    %57 = vector.load %arg5[%c0_23, %c0_24, %c0_25] : memref<1x8x128xf32, #tpu.memory_space<vmem>>, vector<1x8x128xf32>
    tpu.vector_store %arg5[%c0_23, %c0_24, %c0_25], %56 {strides = array<i32>} : memref<1x8x128xf32, #tpu.memory_space<vmem>>, vector<1x8x128xf32>,
    %c0_26 = arith.constant 0 : index
    %c0_27 = arith.constant 0 : index
    %c0_28 = arith.constant 0 : index
    %58 = vector.load %arg6[%c0_26, %c0_27, %c0_28] : memref<1x8x128xf32, #tpu.memory_space<vmem>>, vector<1x8x128xf32>
    %cst_29 = arith.constant dense<0.000000e+00> : vector<8x128xf32>
    %59 = vector.multi_reduction <add>, %52, %cst_29 [0] : vector<1x8x128xf32> to vector<8x128xf32>
    %60 = vector.shape_cast %59 : vector<8x128xf32> to vector<1x8x128xf32>
    %61 = arith.addf %58, %60 : vector<1x8x128xf32>
    %c0_30 = arith.constant 0 : index
    %c0_31 = arith.constant 0 : index
    %c0_32 = arith.constant 0 : index
    %62 = vector.load %arg6[%c0_30, %c0_31, %c0_32] : memref<1x8x128xf32, #tpu.memory_space<vmem>>, vector<1x8x128xf32>
    tpu.vector_store %arg6[%c0_30, %c0_31, %c0_32], %61 {strides = array<i32>} : memref<1x8x128xf32, #tpu.memory_space<vmem>>, vector<1x8x128xf32>,
    return
  }
  func.func @transform_0(%arg0: i32, %arg1: i32) -> (i32, i32) {
    %c1_i32 = arith.constant 1 : i32
    %0 = arith.muli %arg0, %c1_i32 : i32
    %1 = arith.addi %0, %arg1 : i32
    %c0_i32 = arith.constant 0 : i32
    %2 = arith.minsi %1, %c0_i32 : i32
    %c0_i32_0 = arith.constant 0 : i32
    %c0_i32_1 = arith.constant 0 : i32
    return %2, %c0_i32_0 : i32, i32
  }
  func.func @transform_1(%arg0: i32, %arg1: i32) -> (i32, i32) {
    %c1_i32 = arith.constant 1 : i32
    %0 = arith.muli %arg0, %c1_i32 : i32
    %1 = arith.addi %0, %arg1 : i32
    %c0_i32 = arith.constant 0 : i32
    %2 = arith.minsi %1, %c0_i32 : i32
    %c0_i32_0 = arith.constant 0 : i32
    %c0_i32_1 = arith.constant 0 : i32
    return %2, %c0_i32_0 : i32, i32
  }
  func.func @transform_2(%arg0: i32, %arg1: i32) -> (i32, i32) {
    %c1_i32 = arith.constant 1 : i32
    %0 = arith.muli %arg0, %c1_i32 : i32
    %1 = arith.addi %0, %arg1 : i32
    %c0_i32 = arith.constant 0 : i32
    %2 = arith.minsi %1, %c0_i32 : i32
    %c0_i32_0 = arith.constant 0 : i32
    %c0_i32_1 = arith.constant 0 : i32
    return %2, %c0_i32_0 : i32, i32
  }
  func.func @transform_3(%arg0: i32, %arg1: i32) -> (i32, i32, i32) {
    %c0_i32 = arith.constant 0 : i32
    %c0_i32_0 = arith.constant 0 : i32
    %c0_i32_1 = arith.constant 0 : i32
    return %arg0, %c0_i32, %c0_i32_0 : i32, i32, i32
  }
  func.func @transform_4(%arg0: i32, %arg1: i32) -> (i32, i32, i32) {
    %c0_i32 = arith.constant 0 : i32
    %c0_i32_0 = arith.constant 0 : i32
    %c0_i32_1 = arith.constant 0 : i32
    return %arg0, %c0_i32, %c0_i32_0 : i32, i32, i32
  }
}

</mosaic_0001>

<bundles_post_ra>
// kernel: balanced_l1_loss.1
= control target key start
LH: loop header
LB: loop body
LE: loop exit
PB: predicated region body
PF: predicated region fallthrough
CT: control target
= control target key end

     0   :  { %v106_v0 = vlaneseq  ;;  %v173_v13 = vmov 0.0   ;;  %s214_s0 = inlined_call_operand.vmem [shape: f32[8,128], index: 0, kind: input, shape index: {}]   ;;  %s215_s1 = inlined_call_operand.vmem [shape: f32[8,128], index: 1, kind: input, shape index: {}]   ;;  %s216_s2 = inlined_call_operand.vmem [shape: f32[8,128], index: 2, kind: input, shape index: {}]   ;;  %s217_s4 = inlined_call_operand.vmem [shape: f32[1,8,128], index: 4, kind: output, shape index: {1}]   ;;  %s218_s3 = inlined_call_operand.vmem [shape: f32[1,8,128], index: 3, kind: output, shape index: {0}]  }
   0x1   :  { %v114_v1 = vld [vmem:[%s214_s0] sm:$0xff] }
   0x2   :  { %v115_v2 = vld [vmem:[%s215_s1] sm:$0xff]  ;;  %v107_v3 = vshrl.u32 %v106_v0, 7  ;;  %v110_v4 = vand.u32 127, %v106_v0 }
   0x3   :  { %v118_v5 = vsub.f32 %v114_v1, %v115_v2  ;;  %v116_v9 = vld [vmem:[%s216_s2] sm:$0xff] }
   0x4   :  { %v108_v6 = vmul.u32 128, %v107_v3 }
   0x5   :  { %v119_v7 = vand.u32 2147483647, %v118_v5 }
   0x6   :  { %v111_v8 = vadd.s32 %v110_v4, %v108_v6 }
   0x8   :  { %vm113_vm0 = vcmp.lt.s32.totalorder %v111_v8, 256 }
   0x9   :  { %v117_v10 = vsel %vm113_vm0, %v116_v9, 0.0  ;;  %v120_v11 = vsel %vm113_vm0, %v119_v7, 0.0 }
   0xa   :  { %v122_v12 = vmul.f32 19.085537, %v120_v11  ;;  %vm134_vm1 = vcmp.gt.f32.partialorder %v117_v10, 0.0  ;;  %v130_v17 = vmul.f32 1.5, %v120_v11  ;;  %v128_v19 = vmul.f32 0.5, %v120_v11 }
   0xb   :  { %v135_v14 = vsel %vm134_vm1, 1.0, %v173_v13  ;;  %vm121_vm2 = vcmp.lt.f32.partialorder %v120_v11, 1.0 }
   0xc   :  { %v123_v15 = vadd.f32 1.0, %v122_v12  ;;  %143 = vst [vmem:[%s217_s4] sm:$0xff] %v135_v14  ;;  %v131_v22 = vadd.f32 -0.42140645, %v130_v17 }
   0xe   :  { %171 = vlog2.f32 %v123_v15  ;;  %v124_v16 = vmul.f32 0.026197849, %v123_v15 }
  0x18   :  { %v172_v18 = vpop.eup %171 }
  0x19   :  { %v126_v20 = vmul.f32 0.6931472, %v172_v18 }
  0x1b   :  { %v127_v21 = vmul.f32 %v126_v20, %v124_v16 }
  0x1d   :  { %v129_v23 = vsub.f32 %v127_v21, %v128_v19 }
  0x1f   :  { %v132_v24 = vsel %vm121_vm2, %v129_v23, %v131_v22 }
  0x20   :  { %v133_v25 = vmul.f32 %v132_v24, %v117_v10 }
  0x22   :  { %139 = vst [vmem:[%s218_s3] sm:$0xff] %v133_v25 }

</bundles_post_ra>
